<compile_context>
chip_gen: v5e
topology: v5e:2x2
jax: 0.10.0
libtpu: 0.0.40
codegen_flags: <defaults>
</compile_context>

<pallas_src>
import functools

import jax
import jax.numpy as jnp
from jax.experimental import pallas as pl
from jax.experimental.pallas import tpu as pltpu

# ----------------------- model dimensions (small, consistent with module) ----
EMBED_DIM = 16            # embedding_dim
NUM_EMBED = 32            # num_embeddings (vocab)
HIDDEN = 32               # hidden_size
IN_DIM = EMBED_DIM * 2    # LSTM input size (encoder_out cat embedded)
GATE = 4 * HIDDEN         # 128 -> full lane width
VPAD = 128                # vocab padded to a full lane width (lane-dense output)


# ----------------------------- Pallas kernel --------------------------------
def decoder_fused_kernel(T, Tp,
                         x_ref,                 # (Tp, IN_DIM)  [enc | emb] rows
                         h0_ref, c0_ref,        # (1, H)
                         wx_ref,                # (IN_DIM, 4H)
                         whh_ref,               # (H, 4H)
                         b_ref,                 # (1, 4H)
                         wout_ref,              # (H, VPAD)
                         bout_ref,              # (1, VPAD)
                         logp_ref,              # (Tp, VPAD)  out
                         hout_ref, cout_ref):   # (1, H)      out
    # Batched input-side projection, hoisted out of the recurrence:
    # one (Tp, IN_DIM) @ (IN_DIM, 4H) MXU push for all steps.
    xproj = jnp.dot(x_ref[...], wx_ref[...],
                    preferred_element_type=jnp.float32) + b_ref[...]

    whh = whh_ref[...]
    h = h0_ref[...]
    c = c0_ref[...]
    hs = []

    # Statically-unrolled recurrence (T is small & known at trace time); h/c live
    # in vregs only. Gate order follows PyTorch LSTM: [i, f, g, o].
    for t in range(T):
        gates = xproj[t:t + 1, :] + jnp.dot(h, whh,
                                            preferred_element_type=jnp.float32)
        sig = jax.nn.sigmoid(gates)      # one full-width EUP push
        tnh = jnp.tanh(gates)            # one full-width EUP push
        i = sig[:, 0 * HIDDEN:1 * HIDDEN]
        f = sig[:, 1 * HIDDEN:2 * HIDDEN]
        g = tnh[:, 2 * HIDDEN:3 * HIDDEN]
        o = sig[:, 3 * HIDDEN:4 * HIDDEN]
        c = f * c + i * g
        h = o * jnp.tanh(c)
        hs.append(h)
    # TODO(synk): nn.Dropout(0.25) is stochastic in training mode; treated as
    # identity here (eval-mode semantics).

    hout_ref[...] = h
    cout_ref[...] = c

    # Batched epilogue (out of the serialized chain): pad h rows to Tp, one
    # (Tp,H)@(H,VPAD) matmul, batched log_softmax, ONE unmasked slab store.
    for _ in range(Tp - T):
        hs.append(jnp.zeros((1, HIDDEN), jnp.float32))
    h_all = jnp.concatenate(hs, axis=0)                      # (Tp, H)

    logits = jnp.dot(h_all, wout_ref[...],
                     preferred_element_type=jnp.float32) + bout_ref[...]
    m = jnp.max(logits, axis=1, keepdims=True)
    shifted = logits - m
    lse = jnp.log(jnp.sum(jnp.exp(shifted), axis=1, keepdims=True))
    logp_ref[...] = shifted - lse


# ----------------------- one-time parameter preparation ---------------------
def prepare_decoder_params(params):
    """Hoisted out of the hot path: done once, reused for every decode call."""
    wx = params["w_ih"].T.astype(jnp.float32)                              # (IN_DIM, 4H)
    whh = params["w_hh"].T.astype(jnp.float32)                             # (H, 4H)
    b = (params["b_ih"] + params["b_hh"]).reshape(1, -1).astype(jnp.float32)  # (1, 4H)
    wout_pad = jnp.zeros((HIDDEN, VPAD), jnp.float32).at[:, :NUM_EMBED].set(
        params["w_out"].T)                                                 # (H, VPAD)
    bout_pad = jnp.full((1, VPAD), -1e30, jnp.float32).at[0, :NUM_EMBED].set(
        params["b_out"])                                                   # (1, VPAD)
    return {
        "embedding": params["embedding"].astype(jnp.float32),
        "wx": wx, "whh": whh, "b": b,
        "wout_pad": wout_pad, "bout_pad": bout_pad,
    }


# --------------------------- fused multi-step decode -------------------------
def decoder_decode(dparams, encoder_out, word_ids, hidden):
    """Runs T teacher-forced Decoder.forward steps in ONE (grid-less) pallas_call.

    Returns (log_probs (T, V), (h, c) each (1, 1, H))."""
    word_ids = jnp.asarray(word_ids, jnp.int32).reshape(-1)
    T = int(word_ids.shape[0])
    Tp = max(8, ((T + 7) // 8) * 8)   # pad step axis to a full sublane group

    enc = encoder_out.reshape(1, -1).astype(jnp.float32)     # (1, E)
    h0 = hidden[0].reshape(1, -1).astype(jnp.float32)        # (1, H)
    c0 = hidden[1].reshape(1, -1).astype(jnp.float32)        # (1, H)

    # Embedding gather + [enc | emb] assembly in the wrapper: ONE XLA gather,
    # no per-step in-kernel gather / lane assembly.
    emb = jnp.take(dparams["embedding"], word_ids, axis=0)                 # (T, E)
    x_all = jnp.concatenate(
        [jnp.broadcast_to(enc, (T, EMBED_DIM)), emb], axis=1)              # (T, IN_DIM)
    x_all = jnp.zeros((Tp, IN_DIM), jnp.float32).at[:T, :].set(x_all)      # (Tp, IN_DIM)

    kernel = functools.partial(decoder_fused_kernel, T, Tp)

    vmem = pl.BlockSpec(memory_space=pltpu.MemorySpace.VMEM)  # whole array, VMEM-resident
    logp_pad, h1, c1 = pl.pallas_call(
        kernel,
        out_shape=(
            jax.ShapeDtypeStruct((Tp, VPAD), jnp.float32),
            jax.ShapeDtypeStruct((1, HIDDEN), jnp.float32),
            jax.ShapeDtypeStruct((1, HIDDEN), jnp.float32),
        ),
        in_specs=[vmem] * 8,
        out_specs=(vmem, vmem, vmem),
    )(x_all, h0, c0, dparams["wx"], dparams["whh"], dparams["b"],
      dparams["wout_pad"], dparams["bout_pad"])

    logp = logp_pad[:T, :NUM_EMBED]                          # drop step/lane padding
    return logp, (h1.reshape(1, 1, -1), c1.reshape(1, 1, -1))


# ------------------- single-step forward (mirrors Decoder.forward) ----------
def decoder_forward(dparams, encoder_out, word_input, hidden):
    logp, hid = decoder_decode(dparams, encoder_out,
                               jnp.asarray(word_input, jnp.int32).reshape(1), hidden)
    return logp, hid   # logp: (1, V)


# ----------------------- pure-JAX reference (correctness) -------------------
def decoder_forward_ref(params, encoder_out, word_input, hidden):
    emb = params["embedding"][word_input].reshape(1, -1)
    x = jnp.concatenate([encoder_out.reshape(1, -1), emb], axis=1)
    h0 = hidden[0].reshape(1, -1)
    c0 = hidden[1].reshape(1, -1)
    gates = x @ params["w_ih"].T + h0 @ params["w_hh"].T + params["b_ih"] + params["b_hh"]
    i, f, g, o = jnp.split(gates, 4, axis=1)
    i, f, g, o = jax.nn.sigmoid(i), jax.nn.sigmoid(f), jnp.tanh(g), jax.nn.sigmoid(o)
    c1 = f * c0 + i * g
    h1 = o * jnp.tanh(c1)
    logits = h1 @ params["w_out"].T + params["b_out"]
    return jax.nn.log_softmax(logits, axis=1), (h1.reshape(1, 1, -1), c1.reshape(1, 1, -1))


# --------------------------------- main --------------------------------------
if __name__ == "__main__":
    key = jax.random.PRNGKey(0)
    k = jax.random.split(key, 9)
    bound = 1.0 / jnp.sqrt(HIDDEN)

    params = {
        "embedding": jax.random.normal(k[0], (NUM_EMBED, EMBED_DIM), jnp.float32),
        "w_ih": jax.random.uniform(k[1], (4 * HIDDEN, IN_DIM), jnp.float32, -bound, bound),
        "w_hh": jax.random.uniform(k[2], (4 * HIDDEN, HIDDEN), jnp.float32, -bound, bound),
        "b_ih": jax.random.uniform(k[3], (4 * HIDDEN,), jnp.float32, -bound, bound),
        "b_hh": jax.random.uniform(k[4], (4 * HIDDEN,), jnp.float32, -bound, bound),
        "w_out": jax.random.uniform(k[5], (NUM_EMBED, HIDDEN), jnp.float32, -bound, bound),
        "b_out": jax.random.uniform(k[6], (NUM_EMBED,), jnp.float32, -bound, bound),
    }
    dparams = prepare_decoder_params(params)   # hoisted once, reused every call

    encoder_out = jax.random.normal(k[7], (1, 1, EMBED_DIM), jnp.float32)
    hidden0 = (jnp.zeros((1, 1, HIDDEN), jnp.float32),
               jnp.zeros((1, 1, HIDDEN), jnp.float32))

    # ---- 1) single step: exact Decoder.forward semantics -------------------
    word_input = jnp.array(3, dtype=jnp.int32)
    logp, (h1, c1) = decoder_forward(dparams, encoder_out, word_input, hidden0)
    jax.block_until_ready((logp, h1, c1))

    logp_r, (h1_r, c1_r) = decoder_forward_ref(params, encoder_out, word_input, hidden0)
    assert logp.shape == (1, NUM_EMBED) and h1.shape == (1, 1, HIDDEN) and c1.shape == (1, 1, HIDDEN)
    assert jnp.allclose(logp, logp_r, atol=1e-5)
    assert jnp.allclose(h1, h1_r, atol=1e-5)
    assert jnp.allclose(c1, c1_r, atol=1e-5)

    # ---- 2) fused 8-step teacher-forced decode in a single pallas_call -----
    T = 8
    word_ids = jax.random.randint(k[8], (T,), 0, NUM_EMBED, dtype=jnp.int32)
    logps, (hT, cT) = decoder_decode(dparams, encoder_out, word_ids, hidden0)
    jax.block_until_ready((logps, hT, cT))

    hid = hidden0
    ref_rows = []
    for t in range(T):
        lp, hid = decoder_forward_ref(params, encoder_out, word_ids[t], hid)
        ref_rows.append(lp)
    ref_logps = jnp.concatenate(ref_rows, axis=0)

    assert logps.shape == (T, NUM_EMBED)
    assert jnp.allclose(logps, ref_logps, atol=1e-5)
    assert jnp.allclose(hT, hid[0], atol=1e-5)
    assert jnp.allclose(cT, hid[1], atol=1e-5)

    print("KERNEL_OK")
</pallas_src>

<mosaic_0001>
module attributes {stable_mosaic.version = 11 : i64} {
  func.func @decoder_fused_kernel(%arg0: memref<8x32xf32, #tpu.memory_space<vmem>>, %arg1: memref<1x32xf32, #tpu.memory_space<vmem>>, %arg2: memref<1x32xf32, #tpu.memory_space<vmem>>, %arg3: memref<32x128xf32, #tpu.memory_space<vmem>>, %arg4: memref<32x128xf32, #tpu.memory_space<vmem>>, %arg5: memref<1x128xf32, #tpu.memory_space<vmem>>, %arg6: memref<32x128xf32, #tpu.memory_space<vmem>>, %arg7: memref<1x128xf32, #tpu.memory_space<vmem>>, %arg8: memref<8x128xf32, #tpu.memory_space<vmem>>, %arg9: memref<1x32xf32, #tpu.memory_space<vmem>>, %arg10: memref<1x32xf32, #tpu.memory_space<vmem>>) attributes {dimension_semantics = [], scalar_prefetch = 0 : i64, scratch_operands = 0 : i64, tpu.core_type = #tpu.core_type<tc>} {
    %c0 = arith.constant 0 : index
    %c0_0 = arith.constant 0 : index
    %0 = vector.load %arg0[%c0, %c0_0] : memref<8x32xf32, #tpu.memory_space<vmem>>, vector<8x32xf32>
    %c0_1 = arith.constant 0 : index
    %c0_2 = arith.constant 0 : index
    %1 = vector.load %arg3[%c0_1, %c0_2] : memref<32x128xf32, #tpu.memory_space<vmem>>, vector<32x128xf32>
    %cst = arith.constant dense<0.000000e+00> : vector<8x128xf32>
    %2 = tpu.matmul %0, %1, %cst {dimension_numbers = #tpu.dot_dimension_numbers<[1], [0], [0], [1], [0, 0, 1, 1], [], []>} : vector<8x32xf32>, vector<32x128xf32>, vector<8x128xf32> -> vector<8x128xf32>
    %c0_3 = arith.constant 0 : index
    %c0_4 = arith.constant 0 : index
    %3 = vector.load %arg5[%c0_3, %c0_4] : memref<1x128xf32, #tpu.memory_space<vmem>>, vector<1x128xf32>
    %4 = vector.broadcast %3 : vector<1x128xf32> to vector<8x128xf32>
    %5 = arith.addf %2, %4 : vector<8x128xf32>
    %c0_5 = arith.constant 0 : index
    %c0_6 = arith.constant 0 : index
    %6 = vector.load %arg4[%c0_5, %c0_6] : memref<32x128xf32, #tpu.memory_space<vmem>>, vector<32x128xf32>
    %c0_7 = arith.constant 0 : index
    %c0_8 = arith.constant 0 : index
    %7 = vector.load %arg1[%c0_7, %c0_8] : memref<1x32xf32, #tpu.memory_space<vmem>>, vector<1x32xf32>
    %c0_9 = arith.constant 0 : index
    %c0_10 = arith.constant 0 : index
    %8 = vector.load %arg2[%c0_9, %c0_10] : memref<1x32xf32, #tpu.memory_space<vmem>>, vector<1x32xf32>
    %9 = vector.extract_strided_slice %5 {offsets = [0, 0], sizes = [1, 128], strides = [1, 1]} : vector<8x128xf32> to vector<1x128xf32>
    %cst_11 = arith.constant dense<0.000000e+00> : vector<1x128xf32>
    %10 = tpu.matmul %7, %6, %cst_11 {dimension_numbers = #tpu.dot_dimension_numbers<[1], [0], [0], [1], [0, 0, 1, 1], [], []>} : vector<1x32xf32>, vector<32x128xf32>, vector<1x128xf32> -> vector<1x128xf32>
    %11 = arith.addf %9, %10 : vector<1x128xf32>
    %12 = arith.negf %11 : vector<1x128xf32>
    %13 = math.exp %12 : vector<1x128xf32>
    %cst_12 = arith.constant 1.000000e+00 : f32
    %14 = vector.broadcast %cst_12 : f32 to vector<1x128xf32>
    %15 = arith.addf %14, %13 : vector<1x128xf32>
    %16 = arith.divf %14, %15 : vector<1x128xf32>
    %17 = math.tanh %11 : vector<1x128xf32>
    %18 = vector.extract_strided_slice %16 {offsets = [0, 0], sizes = [1, 32], strides = [1, 1]} : vector<1x128xf32> to vector<1x32xf32>
    %19 = vector.extract_strided_slice %16 {offsets = [0, 32], sizes = [1, 32], strides = [1, 1]} : vector<1x128xf32> to vector<1x32xf32>
    %20 = vector.extract_strided_slice %17 {offsets = [0, 64], sizes = [1, 32], strides = [1, 1]} : vector<1x128xf32> to vector<1x32xf32>
    %21 = vector.extract_strided_slice %16 {offsets = [0, 96], sizes = [1, 32], strides = [1, 1]} : vector<1x128xf32> to vector<1x32xf32>
    %22 = arith.mulf %19, %8 : vector<1x32xf32>
    %23 = arith.mulf %18, %20 : vector<1x32xf32>
    %24 = arith.addf %22, %23 : vector<1x32xf32>
    %25 = math.tanh %24 : vector<1x32xf32>
    %26 = arith.mulf %21, %25 : vector<1x32xf32>
    %c0_13 = arith.constant 0 : index
    %c0_14 = arith.constant 0 : index
    %27 = vector.load %arg9[%c0_13, %c0_14] : memref<1x32xf32, #tpu.memory_space<vmem>>, vector<1x32xf32>
    tpu.vector_store %arg9[%c0_13, %c0_14], %26 {strides = array<i32>} : memref<1x32xf32, #tpu.memory_space<vmem>>, vector<1x32xf32>,
    %c0_15 = arith.constant 0 : index
    %c0_16 = arith.constant 0 : index
    %28 = vector.load %arg10[%c0_15, %c0_16] : memref<1x32xf32, #tpu.memory_space<vmem>>, vector<1x32xf32>
    tpu.vector_store %arg10[%c0_15, %c0_16], %24 {strides = array<i32>} : memref<1x32xf32, #tpu.memory_space<vmem>>, vector<1x32xf32>,
    %cst_17 = arith.constant 0.000000e+00 : f32
    %29 = vector.broadcast %cst_17 : f32 to vector<1x32xf32>
    %cst_18 = arith.constant 0.000000e+00 : f32
    %30 = vector.broadcast %cst_18 : f32 to vector<1x32xf32>
    %cst_19 = arith.constant 0.000000e+00 : f32
    %31 = vector.broadcast %cst_19 : f32 to vector<1x32xf32>
    %cst_20 = arith.constant 0.000000e+00 : f32
    %32 = vector.broadcast %cst_20 : f32 to vector<1x32xf32>
    %cst_21 = arith.constant 0.000000e+00 : f32
    %33 = vector.broadcast %cst_21 : f32 to vector<1x32xf32>
    %cst_22 = arith.constant 0.000000e+00 : f32
    %34 = vector.broadcast %cst_22 : f32 to vector<1x32xf32>
    %cst_23 = arith.constant 0.000000e+00 : f32
    %35 = vector.broadcast %cst_23 : f32 to vector<1x32xf32>
    %36 = tpu.concatenate %26, %29, %30, %31, %32, %33, %34, %35 in 0 : vector<1x32xf32>, vector<1x32xf32>, vector<1x32xf32>, vector<1x32xf32>, vector<1x32xf32>, vector<1x32xf32>, vector<1x32xf32>, vector<1x32xf32> -> vector<8x32xf32>
    %c0_24 = arith.constant 0 : index
    %c0_25 = arith.constant 0 : index
    %37 = vector.load %arg6[%c0_24, %c0_25] : memref<32x128xf32, #tpu.memory_space<vmem>>, vector<32x128xf32>
    %cst_26 = arith.constant dense<0.000000e+00> : vector<8x128xf32>
    %38 = tpu.matmul %36, %37, %cst_26 {dimension_numbers = #tpu.dot_dimension_numbers<[1], [0], [0], [1], [0, 0, 1, 1], [], []>} : vector<8x32xf32>, vector<32x128xf32>, vector<8x128xf32> -> vector<8x128xf32>
    %c0_27 = arith.constant 0 : index
    %c0_28 = arith.constant 0 : index
    %39 = vector.load %arg7[%c0_27, %c0_28] : memref<1x128xf32, #tpu.memory_space<vmem>>, vector<1x128xf32>
    %40 = vector.broadcast %39 : vector<1x128xf32> to vector<8x128xf32>
    %41 = arith.addf %38, %40 : vector<8x128xf32>
    %cst_29 = arith.constant dense<0xFF800000> : vector<8xf32>
    %42 = vector.multi_reduction <maximumf>, %41, %cst_29 [1] : vector<8x128xf32> to vector<8xf32>
    %43 = vector.shape_cast %42 : vector<8xf32> to vector<8x1xf32>
    %44 = vector.broadcast %43 : vector<8x1xf32> to vector<8x128xf32>
    %45 = arith.subf %41, %44 : vector<8x128xf32>
    %46 = math.exp %45 : vector<8x128xf32>
    %cst_30 = arith.constant dense<0.000000e+00> : vector<8xf32>
    %47 = vector.multi_reduction <add>, %46, %cst_30 [1] : vector<8x128xf32> to vector<8xf32>
    %48 = vector.shape_cast %47 : vector<8xf32> to vector<8x1xf32>
    %49 = math.log %48 : vector<8x1xf32>
    %50 = vector.broadcast %49 : vector<8x1xf32> to vector<8x128xf32>
    %51 = arith.subf %45, %50 : vector<8x128xf32>
    %c0_31 = arith.constant 0 : index
    %c0_32 = arith.constant 0 : index
    %52 = vector.load %arg8[%c0_31, %c0_32] : memref<8x128xf32, #tpu.memory_space<vmem>>, vector<8x128xf32>
    tpu.vector_store %arg8[%c0_31, %c0_32], %51 {strides = array<i32>} : memref<8x128xf32, #tpu.memory_space<vmem>>, vector<8x128xf32>,
    return
  }
}

</mosaic_0001>

<bundles_post_ra>
// kernel: tpu_custom_call.1
= control target key start
LH: loop header
LB: loop body
LE: loop exit
PB: predicated region body
PF: predicated region fallthrough
CT: control target
= control target key end

     0   :  { %16 = vsyncpa [#allocation3], 0  ;;  %s676_s0 = inlined_call_operand.hbm [shape: f32[8,32], index: 0, kind: input, shape index: {}]   ;;  %s677_s1 = inlined_call_operand.hbm [shape: f32[1,32], index: 1, kind: input, shape index: {}]   ;;  %s678_s2 = inlined_call_operand.vmem [shape: f32[1,32], index: 2, kind: input, shape index: {}]   ;;  %s679_s3 = inlined_call_operand.hbm [shape: f32[32,128], index: 3, kind: input, shape index: {}]   ;;  %s680_s4 = inlined_call_operand.hbm [shape: f32[32,128], index: 4, kind: input, shape index: {}]   ;;  %s681_s5 = inlined_call_operand.vmem [shape: f32[1,128], index: 5, kind: input, shape index: {}]   ;;  %s682_s6 = inlined_call_operand.hbm [shape: f32[32,128], index: 6, kind: input, shape index: {}]   ;;  %s683_s7 = inlined_call_operand.vmem [shape: f32[1,128], index: 7, kind: input, shape index: {}]   ;;  %s684_s8 = inlined_call_operand.hbm [shape: f32[8,128], index: 8, kind: output, shape index: {0}]   ;;  %s685_s9 = inlined_call_operand.hbm [shape: f32[1,32], index: 9, kind: output, shape index: {1}]   ;;  %s686_s10 = inlined_call_operand.hbm [shape: f32[1,32], index: 10, kind: output, shape index: {2}]  }
   0x1   :  { %17 = vsyncpa [#allocation6], 0 }
   0x2   :  { %18 = vsyncpa [#allocation9], 0 }
   0x3   :  { %19 = vsyncpa [#allocation4], 0  ;;  %s37_s15 = sshll.u32 %s677_s1, 4  ;;  %s38_s15 = int_to_ptr.hbm [resolvable:$true] %s37_s15 }
   0x4   :  { %20 = vsyncpa [#allocation13], 0  ;;  %s566_s16 = smov [#allocation5]   ;;  %s62_s20 = sshll.u32 %s680_s4, 4  ;;  %s63_s20 = int_to_ptr.hbm [resolvable:$true] %s62_s20 }
   0x5   :  { %s39_s17 = sshll.u32 %s566_s16, 4  ;;  %s567_s21 = smov [#allocation8]   ;;  %s40_s17 = int_to_ptr.vmem [resolvable:$true] %s39_s17 }
   0x6   :  { %42 = dma.hbm_to_vmem [thread:$0]  %s38_s15, 16, %s40_s17, [#allocation6]  }
   0x7   :  { %s64_s22 = sshll.u32 %s567_s21, 4  ;;  %s26_s25 = sshll.u32 %s676_s0, 4  ;;  %s65_s22 = int_to_ptr.vmem [resolvable:$true] %s64_s22  ;;  %s27_s25 = int_to_ptr.hbm [resolvable:$true] %s26_s25 }
   0x8   :  { %s568_s1 = smov 128   ;;  %s569_s26 = smov 8  }
   0x9   :  { %70 = dma.hbm_to_vmem [thread:$0]  %s63_s20, 512, %s65_s22, [#allocation9], %s568_s1, %s568_s1, %s569_s26  }
   0xa   :  { %s49_s29 = sshll.u32 %s679_s3, 4  ;;  %s570_s30 = smov [#allocation2]   ;;  %s50_s29 = int_to_ptr.hbm [resolvable:$true] %s49_s29 }
   0xb   :  { %s28_s11 = sshll.u32 %s570_s30, 4  ;;  %s571_s4 = smov [#allocation7]   ;;  %s29_s11 = int_to_ptr.vmem [resolvable:$true] %s28_s11 }
   0xc   :  { %31 = dma.hbm_to_vmem [thread:$0]  %s27_s25, 128, %s29_s11, [#allocation3]  }
   0xd   :  { %s51_s12 = sshll.u32 %s571_s4, 4  ;;  %s77_s0 = sshll.u32 %s682_s6, 4  ;;  %s52_s12 = int_to_ptr.vmem [resolvable:$true] %s51_s12  ;;  %s78_s0 = int_to_ptr.hbm [resolvable:$true] %s77_s0 }
   0xe   :  { %57 = dma.hbm_to_vmem [thread:$0]  %s50_s29, 512, %s52_s12, [#allocation6], %s568_s1, %s568_s1, %s569_s26  }
   0xf   :  { %s572_s15 = smov [#allocation10]  }
  0x10   :  { %s79_s16 = sshll.u32 %s572_s15, 4  ;;  %s80_s16 = int_to_ptr.vmem [resolvable:$true] %s79_s16 }
  0x11   :  { %85 = dma.hbm_to_vmem [thread:$0]  %s78_s0, 512, %s80_s16, [#allocation9], %s568_s1, %s568_s1, %s569_s26  }
  0x12   :  { %556 = dma.done.wait [#allocation3], 128  }
  0x13   :  { %557 = vsyncadd [#allocation3], 4294967168 }
  0x14   :  { %558 = dma.done.wait [#allocation6], 528  }
  0x15   :  { %559 = vsyncadd [#allocation6], 4294966768 }
  0x16   :  { %560 = dma.done.wait [#allocation9], 1024  }
  0x17   :  { %561 = vsyncadd [#allocation9], 4294966272  ;;  %v112_v0 = vld [vmem:[#allocation7 + $0x18] sm:$0xff]  ;;  %v111_v1 = vld [vmem:[#allocation7 + $0x10] sm:$0xff]  ;;  %vm117_vm0 = vcmask 261120   ;;  %s573_s17 = smov 64  }
  0x18   :  { %v144_v2 = vld [vmem:[#allocation8 + $0x18] sm:$0xff]  ;;  %133 = vmatpush.msra.mxu0 %v112_v0  ;;  %v143_v3 = vld [vmem:[#allocation8 + $0x10] sm:$0xff]  ;;  %v110_v4 = vld [vmem:[#allocation7 + $0x8] sm:$0xff]  ;;  %s574_s20 = smov 32   ;;  %vm224_vm5 = vcmask 1040384   ;;  %vm226_vm6 = vcmask 1041408  }
  0x19   :  { %162 = vmatpush.msra.mxu1 %v144_v2  ;;  %v142_v5 = vld [vmem:[#allocation8 + $0x8] sm:$0xff]  ;;  %v109_v6 = vld [vmem:[#allocation7] sm:$0xff]  ;;  %v108_v8 = vld [vmem:[#allocation2] sm:$0xff]  ;;  %vm228_vm7 = vcmask 1042432   ;;  %vm230_vm8 = vcmask 1043456   ;;  %vm232_vm9 = vcmask 1044480  }
  0x1a   :  { %134 = vmatpush.msra.mxu0 %v111_v1  ;;  %v141_v7 = vld [vmem:[#allocation8] sm:$0xff]  ;;  %v145_v9 = vld [vmem:[#allocation5] sm:$0x1]  ;;  %v349_v10 = vld [vmem:[%s681_s5] ss:$0 sm:$0xff]  ;;  %vm234_vm10 = vcmask 1045504  }
  0x1b   :  { %163 = vmatpush.msra.mxu1 %v143_v3  ;;  %v350_v16 = vld [vmem:[%s678_s2] ss:$0 sm:$0xff]  ;;  %v241_v37 = vld [vmem:[#allocation10 + $0x18] sm:$0xff]  ;;  %v239_v39 = vld [vmem:[#allocation10 + $0x8] sm:$0xff]  ;;  %vm236_vm11 = vcmask 1046528   ;;  %s575_s2 = smov 96  }
  0x1c   :  { %135 = vmatpush.msra.mxu0 %v110_v4  ;;  %v240_v38 = vld [vmem:[#allocation10 + $0x10] sm:$0xff]  ;;  %263 = vmatpush.msra.mxu2 %v241_v37  ;;  %v238_v40 = vld [vmem:[#allocation10] sm:$0xff]  ;;  %vm217_vm12 = vcmask 253952   ;;  %s576_s22 = smov [#allocation12]   ;;  %s300_s1 = sshll.u32 %s685_s9, 4  ;;  %s301_s1 = int_to_ptr.hbm [resolvable:$true] %s300_s1 }
  0x1d   :  { %164 = vmatpush.msra.mxu1 %v142_v5  ;;  %v351_v53 = vld [vmem:[%s683_s7] ss:$0 sm:$0xff]  ;;  %s298_s23 = sshll.u32 %s576_s22, 4  ;;  %s577_s26 = smov [#allocation14]   ;;  %s299_s23 = int_to_ptr.vmem [resolvable:$true] %s298_s23 }
  0x1e   :  { %136 = vmatpush.msra.mxu0 %v109_v6  ;;  %264 = vmatpush.msra.mxu2 %v240_v38  ;;  %s309_s7 = sshll.u32 %s577_s26, 4  ;;  %s311_s29 = sshll.u32 %s686_s10, 4  ;;  %s310_s7 = int_to_ptr.vmem [resolvable:$true] %s309_s7  ;;  %s312_s29 = int_to_ptr.hbm [resolvable:$true] %s311_s29 }
  0x1f   :  { %165 = vmatpush.msra.mxu1 %v141_v7  ;;  %332 = vmatmul.msk.f32.vlgmr.msra.gmra.mxu0 %vm117_vm0, %v108_v8  ;;  %s578_s30 = smov [#allocation11]   ;;  %s289_s12 = sshll.u32 %s684_s8, 4  ;;  %s290_s12 = int_to_ptr.hbm [resolvable:$true] %s289_s12 }
  0x20   :  { %333 = vmatmul.msk.f32.vlgmr.msra.gmra.mxu1 %vm117_vm0, %v145_v9  ;;  %265 = vmatpush.msra.mxu2 %v239_v39  ;;  %s287_s11 = sshll.u32 %s578_s30, 4  ;;  %s288_s11 = int_to_ptr.vmem [resolvable:$true] %s287_s11 }
  0x22   :  { %266 = vmatpush.msra.mxu2 %v238_v40 }
  0x9c   :  { %v138_v11 = vpop.f32.mrf.mxu0 }
  0x9d   :  { %v167_v12 = vpop.f32.mrf.mxu1  ;;  %v139_v13 = vadd.f32 %v349_v10, %v138_v11 }
  0x9f   :  { %v170_v14 = vadd.f32 %v167_v12, %v139_v13 }
  0xa1   :  { %352 = vtanh.f32 %v170_v14  ;;  %v334_v17 = vmul.f32 -1.442695, %v170_v14 }
  0xa3   :  { %354 = vpow2.f32 %v334_v17 }
  0xa7   :  { %v353_v15 = vpop.eup %352 }
  0xa8   :  { %198 = vrot.lane.b32.xlu0 %v353_v15, %s573_s17 }
  0xa9   :  { %v355_v18 = vpop.eup %354 }
  0xaa   :  { %v174_v19 = vadd.f32 1.0, %v355_v18 }
  0xac   :  { %356 = vrcp.f32 %v174_v19  ;;  %v186_v25 = vand.u32 2147483648, %v174_v19  ;;  %vm180_vm2 = vweird.f32 %v174_v19  ;;  %v184_v26 = vand.u32 2147483647, %v174_v19 }
  0xae   :  { %v187_v28 = vor.u32 1.1754944e-38, %v186_v25  ;;  %vm185_vm4 = vcmp.eq.f32.partialorder %v184_v26, 8.507059e+37 }
  0xb0   :  { %193 = vrot.lane.b32.xlu0 %v350_v16, %s574_s20 }
  0xb2   :  { %v357_v20 = vpop.eup %356 }
  0xb3   :  { %v176_v21 = vmul.f32 %v357_v20, %v174_v19  ;;  %vm181_vm1 = vweird.f32 %v357_v20 }
  0xb4   :  { %vm182_vm3 = vmor %vm180_vm2, %vm181_vm1 }
  0xb5   :  { %v177_v22 = vsub.f32 1.0, %v176_v21 }
  0xb7   :  { %v178_v23 = vmul.f32 %v357_v20, %v177_v22 }
  0xb9   :  { %v179_v24 = vadd.f32 %v357_v20, %v178_v23 }
  0xbb   :  { %v183_v27 = vsel %vm182_vm3, %v357_v20, %v179_v24 }
  0xbc   :  { %v188_v30 = vsel %vm185_vm4, %v187_v28, %v183_v27 }
 0x11a   :  { %v199_v29 = vpop.permute.xlu0 %198 }
 0x11b   :  { %v201_v31 = vmul.f32 %v199_v29, %v188_v30 }
 0x11d   :  { %203 = vrot.lane.b32.xlu1 %v201_v31, %s574_s20 }
 0x122   :  { %v194_v32 = vpop.permute.xlu0 %193 }
 0x123   :  { %v196_v33 = vmul.f32 %v194_v32, %v188_v30 }
 0x18f   :  { %v204_v34 = vpop.permute.xlu1 %203 }
 0x190   :  { %v206_v35 = vadd.f32 %v204_v34, %v196_v33 }
 0x192   :  { %358 = vtanh.f32 %v206_v35 }
 0x198   :  { %v359_v36 = vpop.eup %358 }
 0x199   :  { %209 = vrot.lane.b32.xlu1 %v359_v36, %s573_s17 }
 0x20b   :  { %v210_v41 = vpop.permute.xlu1 %209 }
 0x20c   :  { %v212_v42 = vmul.f32 %v210_v41, %v188_v30 }
 0x20e   :  { %v225_v43 = vsel %vm224_vm5, %v212_v42, 0.0  ;;  %214 = vrot.lane.b32.xlu1 %v212_v42, %s574_s20 }
 0x20f   :  { %v227_v44 = vsel %vm226_vm6, %v225_v43, 0.0 }
 0x210   :  { %v229_v45 = vsel %vm228_vm7, %v227_v44, 0.0 }
 0x211   :  { %v231_v46 = vsel %vm230_vm8, %v229_v45, 0.0 }
 0x212   :  { %v233_v47 = vsel %vm232_vm9, %v231_v46, 0.0 }
 0x213   :  { %v235_v48 = vsel %vm234_vm10, %v233_v47, 0.0 }
 0x214   :  { %v237_v49 = vsel %vm236_vm11, %v235_v48, 0.0 }
 0x215   :  { %247 = vrot.lane.b32.xlu2 %v237_v49, %s574_s20 }
 0x216   :  { %220 = vrot.lane.b32.xlu1 %v206_v35, %s575_s2 }
 0x26f   :  { %v248_v50 = vpop.permute.xlu2 %247 }
 0x270   :  { %335 = vmatmul.msk.f32.vlgmr.msra.gmra.mxu2 %vm117_vm0, %v248_v50 }
 0x280   :  { %v215_v51 = vpop.permute.xlu1 %214 }
 0x281   :  { %218 = vst.msk [vmem:[#allocation12] sm:$0x1] %vm217_vm12, %v215_v51 }
 0x282   :  { %303 = dma.vmem_to_hbm [thread:$0]  %s299_s23, 16, %s301_s1, [#allocation13]  }
 0x288   :  { %v221_v52 = vpop.permute.xlu1 %220 }
 0x289   :  { %223 = vst.msk [vmem:[#allocation14] sm:$0x1] %vm217_vm12, %v221_v52 }
 0x28a   :  { %314 = dma.vmem_to_hbm [thread:$0]  %s310_s7, 16, %s312_s29, [#allocation13]  }
 0x2f3   :  { %v268_v54 = vpop.f32.mrf.mxu2 }
 0x2f4   :  { %v269_v55 = vadd.f32 %v351_v53, %v268_v54 }
 0x2f6   :  { %271 = vmax.xlane.f32.xlu2 %v269_v55 }
 0x369   :  { %v272_v56 = vpop.xlane.xlu2 %271 }
 0x36a   :  { %v273_v57 = vsub.f32 %v269_v55, %v272_v56 }
 0x36c   :  { %v274_v58 = vmul.f32 1.442695, %v273_v57 }
 0x36e   :  { %360 = vpow2.f32 %v274_v58 }
 0x374   :  { %v361_v59 = vpop.eup %360 }
 0x375   :  { %276 = vadd.xlane.f32.xlu0 %v361_v59 }
 0x3e8   :  { %v277_v60 = vpop.xlane.xlu0 %276 }
 0x3e9   :  { %362 = vlog2.f32 %v277_v60 }
 0x3ef   :  { %v363_v61 = vpop.eup %362 }
 0x3f0   :  { %v279_v62 = vmul.f32 0.6931472, %v363_v61 }
 0x3f2   :  { %v280_v63 = vsub.f32 %v273_v57, %v279_v62 }
 0x3f4   :  { %281 = vst [vmem:[#allocation11] sm:$0xff] %v280_v63 }
 0x3f5   :  { %292 = dma.vmem_to_hbm [thread:$0]  %s288_s11, 128, %s290_s12, [#allocation4]  }
 0x3f6   :  { %562 = dma.done.wait [#allocation4], 128  }
 0x3f7   :  { %563 = vsyncadd [#allocation4], 4294967168 }
 0x3f8   :  { %564 = dma.done.wait [#allocation13], 32  }
 0x3f9   :  { %565 = vsyncadd [#allocation13], 4294967264 }
 0x3fa   :  { %327 = vsyncpa [#allocation3], 1 }
 0x3fb   :  { %328 = vsyncpa [#allocation6], 1 }
 0x3fc   :  { %329 = vsyncpa [#allocation9], 1 }
 0x3fd   :  { %330 = vsyncpa [#allocation4], 1 }
 0x3fe   :  { %331 = vsyncpa [#allocation13], 1 }

</bundles_post_ra>
